<compile_context>
chip_gen: v7x
topology: tpu7x:2x2x1
jax: 0.10.0
libtpu: 0.0.40
codegen_flags: <defaults>
</compile_context>

<pallas_src>
import functools
import math

import jax
import jax.numpy as jnp
import numpy as np
from jax.experimental import pallas as pl
from jax.experimental.pallas import tpu as pltpu

NEG_INF = -1e9  # additive-mask constant; safe in f32 (revisit if scores go bf16)


# ---------------------------------------------------------------------------
# Kernel helpers
# ---------------------------------------------------------------------------
def _layernorm(x, gamma, beta, eps):
    # x: (S, D), gamma/beta: (1, D)
    mean = jnp.mean(x, axis=-1, keepdims=True)
    var = jnp.mean((x - mean) ** 2, axis=-1, keepdims=True)
    return (x - mean) * jax.lax.rsqrt(var + eps) * gamma + beta


def _encoder_layer_kernel(*refs, nhead, d_model, eps,
                          has_pos, has_attn_mask, has_key_mask,
                          fuse_final_norm):
    out_ref = refs[-1]
    it = iter(refs[:-1])
    src_ref = next(it)
    pos_ref = next(it) if has_pos else None
    am_ref = next(it) if has_attn_mask else None
    km_ref = next(it) if has_key_mask else None
    wqkv_ref, bqkv_ref = next(it), next(it)
    wo_ref, bo_ref = next(it), next(it)
    ln1_g_ref, ln1_b_ref = next(it), next(it)
    w1_ref, b1_ref = next(it), next(it)
    w2_ref, b2_ref = next(it), next(it)
    ln2_g_ref, ln2_b_ref = next(it), next(it)
    fn_g_ref = next(it) if fuse_final_norm else None
    fn_b_ref = next(it) if fuse_final_norm else None

    D = d_model
    H = nhead
    dh = D // H

    src = src_ref[0]                         # (S, D)
    w_qkv = wqkv_ref[...]                    # (D, 3D); 1/sqrt(dh) folded into Q cols
    b_qkv = bqkv_ref[...]                    # (1, 3D)

    # ---- fused QKV projection (no in-kernel weight transposes) -------------
    if has_pos:
        qk_in = src + pos_ref[0]
        qk = jnp.dot(qk_in, w_qkv[:, :2 * D],
                     preferred_element_type=jnp.float32) + b_qkv[:, :2 * D]
        v = jnp.dot(src, w_qkv[:, 2 * D:],
                    preferred_element_type=jnp.float32) + b_qkv[:, 2 * D:]
        q, k = qk[:, :D], qk[:, D:]
    else:
        qkv = jnp.dot(src, w_qkv, preferred_element_type=jnp.float32) + b_qkv
        q, k, v = qkv[:, :D], qkv[:, D:2 * D], qkv[:, 2 * D:]

    # ---- batched multi-head attention over an (H, S, dh) slab --------------
    qh = jnp.stack([q[:, h * dh:(h + 1) * dh] for h in range(H)], axis=0)
    kh = jnp.stack([k[:, h * dh:(h + 1) * dh] for h in range(H)], axis=0)
    vh = jnp.stack([v[:, h * dh:(h + 1) * dh] for h in range(H)], axis=0)

    s = jnp.einsum('hqd,hkd->hqk', qh, kh,
                   preferred_element_type=jnp.float32)        # (H, S, S)
    if has_attn_mask:
        s = s + am_ref[...]             # (S, S) broadcasts over heads
    if has_key_mask:
        s = s + km_ref[...]             # (1, 1, S) broadcasts over heads/queries

    s = s - jnp.max(s, axis=-1, keepdims=True)
    p = jnp.exp(s)
    p = p * pl.reciprocal(jnp.sum(p, axis=-1, keepdims=True), approx=True)

    ctx = jnp.einsum('hqk,hkd->hqd', p, vh,
                     preferred_element_type=jnp.float32)       # (H, S, dh)
    # Output projection without lane concat: sum_h ctx_h @ Wout[h],
    # Wout pre-reshaped host-side to (H, dh, D).
    attn = jnp.sum(jnp.einsum('hqd,hdo->hqo', ctx, wo_ref[...],
                              preferred_element_type=jnp.float32), axis=0)
    attn = attn + bo_ref[...]

    # ---- residual + LayerNorm 1 (dropout = identity in eval) ---------------
    x1 = _layernorm(src + attn, ln1_g_ref[...], ln1_b_ref[...], eps)

    # ---- FFN ----------------------------------------------------------------
    h1 = jnp.dot(x1, w1_ref[...], preferred_element_type=jnp.float32) + b1_ref[...]
    h1 = jnp.maximum(h1, 0.0)
    h2 = jnp.dot(h1, w2_ref[...], preferred_element_type=jnp.float32) + b2_ref[...]

    # ---- residual + LayerNorm 2 (+ optional fused final LayerNorm) ---------
    y = _layernorm(x1 + h2, ln2_g_ref[...], ln2_b_ref[...], eps)
    if fuse_final_norm:
        y = _layernorm(y, fn_g_ref[...], fn_b_ref[...], eps)
    out_ref[0] = y.astype(out_ref.dtype)


# ---------------------------------------------------------------------------
# Host-side weight preparation (pre-transpose, scale folding) — free plumbing
# ---------------------------------------------------------------------------
def _prepare_layer_params(p, nhead):
    D = p["out_w"].shape[0]
    dh = D // nhead
    scale = 1.0 / math.sqrt(dh)
    w_qkv = jnp.transpose(p["in_w"])                  # (D, 3D)
    w_qkv = w_qkv.at[:, :D].multiply(scale)           # fold 1/sqrt(dh) into Q
    b_qkv = p["in_b"].at[:, :D].multiply(scale)
    return {
        "w_qkv": w_qkv, "b_qkv": b_qkv,
        "w_out": jnp.transpose(p["out_w"]).reshape(nhead, dh, D),
        "b_out": p["out_b"],
        "ln1_g": p["ln1_g"], "ln1_b": p["ln1_b"],
        "w1": jnp.transpose(p["lin1_w"]), "b1": p["lin1_b"],
        "w2": jnp.transpose(p["lin2_w"]), "b2": p["lin2_b"],
        "ln2_g": p["ln2_g"], "ln2_b": p["ln2_b"],
    }


def _layer_vmem_bytes(S, D, F, H, has_pos, has_am, has_km):
    f32 = 4
    weights = (3 * D * D + 3 * D + D * D + D + D * F + F + F * D + D + 8 * D) * f32
    acts = (4 * S * 3 * D + 2 * H * S * S + 2 * S * F + 8 * S * D) * f32
    io = 2 * ((2 + int(has_pos)) * S * D + int(has_am) * S * S + int(has_km) * S) * f32
    return 2 * weights + acts + io


# ---------------------------------------------------------------------------
# Pallas wrapper (one encoder layer per call)
# ---------------------------------------------------------------------------
def _encoder_layer_pallas(x, pos, attn_add, key_add, lp, nhead, final_norm=None):
    B, S, D = x.shape
    F = lp["w1"].shape[1]
    H = nhead

    has_pos = pos is not None
    has_am = attn_add is not None
    has_km = key_add is not None
    fuse_fn = final_norm is not None

    def rep(arr):  # full-array block, replicated across grid steps
        nd = arr.ndim
        return pl.BlockSpec(arr.shape, lambda b, _nd=nd: (0,) * _nd)

    inputs = [x]
    in_specs = [pl.BlockSpec((1, S, D), lambda b: (b, 0, 0))]
    if has_pos:
        inputs.append(pos)
        in_specs.append(pl.BlockSpec((1, S, D), lambda b: (b, 0, 0)))
    if has_am:
        inputs.append(attn_add)                    # (S, S) additive mask
        in_specs.append(rep(attn_add))
    if has_km:
        inputs.append(key_add)                     # (B, 1, S) additive key mask
        in_specs.append(pl.BlockSpec((1, 1, S), lambda b: (b, 0, 0)))

    weight_list = [lp["w_qkv"], lp["b_qkv"], lp["w_out"], lp["b_out"],
                   lp["ln1_g"], lp["ln1_b"], lp["w1"], lp["b1"],
                   lp["w2"], lp["b2"], lp["ln2_g"], lp["ln2_b"]]
    if fuse_fn:
        weight_list += [final_norm["g"], final_norm["b"]]
    for w in weight_list:
        inputs.append(w)
        in_specs.append(rep(w))

    kernel = functools.partial(
        _encoder_layer_kernel, nhead=H, d_model=D, eps=1e-5,
        has_pos=has_pos, has_attn_mask=has_am, has_key_mask=has_km,
        fuse_final_norm=fuse_fn)

    vmem_limit = int(min(64 * 2 ** 20,
                         max(32 * 2 ** 20,
                             2 * _layer_vmem_bytes(S, D, F, H,
                                                   has_pos, has_am, has_km))))

    return pl.pallas_call(
        kernel,
        out_shape=jax.ShapeDtypeStruct((B, S, D), x.dtype),
        grid=(B,),
        in_specs=in_specs,
        out_specs=pl.BlockSpec((1, S, D), lambda b: (b, 0, 0)),
        compiler_params=pltpu.CompilerParams(
            dimension_semantics=("parallel",),
            vmem_limit_bytes=vmem_limit),
    )(*inputs)


def transformer_encoder_forward(src, layer_params, nhead,
                                norm_params=None, mask=None,
                                src_key_padding_mask=None, pos=None):
    """src/pos: (S, B, D) PyTorch layout. mask: (S,S) additive/bool or None.
    src_key_padding_mask: (B, S) bool or None. Returns (S, B, D)."""
    S, B, D = src.shape
    x = jnp.transpose(src, (1, 0, 2))                           # (B, S, D)
    pos_b = None if pos is None else jnp.transpose(pos, (1, 0, 2))

    attn_add = None
    if mask is not None:
        attn_add = (jnp.where(mask, NEG_INF, 0.0) if mask.dtype == jnp.bool_
                    else mask).astype(jnp.float32)               # (S, S)
    key_add = None
    if src_key_padding_mask is not None:
        key_add = jnp.where(src_key_padding_mask, NEG_INF, 0.0).astype(
            jnp.float32)[:, None, :]                             # (B, 1, S)

    prepped = [_prepare_layer_params(lp, nhead) for lp in layer_params]
    n = len(prepped)
    for i, lp in enumerate(prepped):
        fn = norm_params if (norm_params is not None and i == n - 1) else None
        x = _encoder_layer_pallas(x, pos_b, attn_add, key_add, lp, nhead,
                                  final_norm=fn)
    if norm_params is not None and n == 0:   # degenerate: no layers
        x = _ref_ln(x, norm_params["g"][0], norm_params["b"][0])
    return jnp.transpose(x, (1, 0, 2))


# ---------------------------------------------------------------------------
# Deterministic parameter init (synthetic, PyTorch layout; not a checkpoint)
# ---------------------------------------------------------------------------
def make_layer_params(key, d_model, dim_ff):
    ks = jax.random.split(key, 4)
    s = 0.05
    return {
        "in_w":  jax.random.normal(ks[0], (3 * d_model, d_model), jnp.float32) * s,
        "in_b":  jnp.zeros((1, 3 * d_model), jnp.float32),
        "out_w": jax.random.normal(ks[1], (d_model, d_model), jnp.float32) * s,
        "out_b": jnp.zeros((1, d_model), jnp.float32),
        "ln1_g": jnp.ones((1, d_model), jnp.float32),
        "ln1_b": jnp.zeros((1, d_model), jnp.float32),
        "lin1_w": jax.random.normal(ks[2], (dim_ff, d_model), jnp.float32) * s,
        "lin1_b": jnp.zeros((1, dim_ff), jnp.float32),
        "lin2_w": jax.random.normal(ks[3], (d_model, dim_ff), jnp.float32) * s,
        "lin2_b": jnp.zeros((1, d_model), jnp.float32),
        "ln2_g": jnp.ones((1, d_model), jnp.float32),
        "ln2_b": jnp.zeros((1, d_model), jnp.float32),
    }


# ---------------------------------------------------------------------------
# Pure-JAX reference (mirrors PyTorch semantics) for a sanity check
# ---------------------------------------------------------------------------
def _ref_ln(x, g, b, eps=1e-5):
    mean = jnp.mean(x, axis=-1, keepdims=True)
    var = jnp.mean((x - mean) ** 2, axis=-1, keepdims=True)
    return (x - mean) / jnp.sqrt(var + eps) * g + b


def _ref_layer(x, pos, p, nhead):
    B, S, D = x.shape
    dh = D // nhead
    qk_in = x + pos
    q = qk_in @ p["in_w"][:D].T + p["in_b"][0, :D]
    k = qk_in @ p["in_w"][D:2 * D].T + p["in_b"][0, D:2 * D]
    v = x @ p["in_w"][2 * D:].T + p["in_b"][0, 2 * D:]
    qh = q.reshape(B, S, nhead, dh).transpose(0, 2, 1, 3) / math.sqrt(dh)
    kh = k.reshape(B, S, nhead, dh).transpose(0, 2, 1, 3)
    vh = v.reshape(B, S, nhead, dh).transpose(0, 2, 1, 3)
    s = jnp.einsum("bhqd,bhkd->bhqk", qh, kh)
    pr = jax.nn.softmax(s, axis=-1)
    attn = jnp.einsum("bhqk,bhkd->bhqd", pr, vh).transpose(0, 2, 1, 3).reshape(B, S, D)
    attn = attn @ p["out_w"].T + p["out_b"][0]
    x = _ref_ln(x + attn, p["ln1_g"][0], p["ln1_b"][0])
    h = jax.nn.relu(x @ p["lin1_w"].T + p["lin1_b"][0])
    h = h @ p["lin2_w"].T + p["lin2_b"][0]
    return _ref_ln(x + h, p["ln2_g"][0], p["ln2_b"][0])


def _ref_forward(src, layer_params, nhead, norm_params, pos):
    x = jnp.transpose(src, (1, 0, 2))
    p = jnp.transpose(pos, (1, 0, 2))
    for lp in layer_params:
        x = _ref_layer(x, p, lp, nhead)
    if norm_params is not None:
        x = _ref_ln(x, norm_params["g"][0], norm_params["b"][0])
    return jnp.transpose(x, (1, 0, 2))


# ---------------------------------------------------------------------------
if __name__ == "__main__":
    S, B, D = 16, 2, 32          # seq, batch, d_model
    NHEAD, DIM_FF, NUM_LAYERS = 4, 64, 2

    key = jax.random.PRNGKey(0)
    k_src, k_pos, *k_layers = jax.random.split(key, 2 + NUM_LAYERS)

    src = jax.random.normal(k_src, (S, B, D), jnp.float32)
    pos = jax.random.normal(k_pos, (S, B, D), jnp.float32)

    layer_params = [make_layer_params(k, D, DIM_FF) for k in k_layers]
    norm_params = {"g": jnp.ones((1, D), jnp.float32),
                   "b": jnp.zeros((1, D), jnp.float32)}

    out = transformer_encoder_forward(
        src, layer_params, NHEAD, norm_params=norm_params,
        mask=None, src_key_padding_mask=None, pos=pos)
    out = jax.block_until_ready(out)

    ref = _ref_forward(src, layer_params, NHEAD, norm_params, pos)
    np.testing.assert_allclose(np.asarray(out), np.asarray(ref),
                               rtol=2e-2, atol=2e-2)

    print("KERNEL_OK")
</pallas_src>

<mosaic_0001>
module attributes {stable_mosaic.version = 11 : i64} {
  func.func @_encoder_layer_kernel(%arg0: i32, %arg1: memref<1x16x32xf32, #tpu.memory_space<vmem>>, %arg2: memref<1x16x32xf32, #tpu.memory_space<vmem>>, %arg3: memref<32x96xf32, #tpu.memory_space<vmem>>, %arg4: memref<1x96xf32, #tpu.memory_space<vmem>>, %arg5: memref<4x8x32xf32, #tpu.memory_space<vmem>>, %arg6: memref<1x32xf32, #tpu.memory_space<vmem>>, %arg7: memref<1x32xf32, #tpu.memory_space<vmem>>, %arg8: memref<1x32xf32, #tpu.memory_space<vmem>>, %arg9: memref<32x64xf32, #tpu.memory_space<vmem>>, %arg10: memref<1x64xf32, #tpu.memory_space<vmem>>, %arg11: memref<64x32xf32, #tpu.memory_space<vmem>>, %arg12: memref<1x32xf32, #tpu.memory_space<vmem>>, %arg13: memref<1x32xf32, #tpu.memory_space<vmem>>, %arg14: memref<1x32xf32, #tpu.memory_space<vmem>>, %arg15: memref<1x16x32xf32, #tpu.memory_space<vmem>>) attributes {dimension_semantics = [#tpu.dimension_semantics<parallel>], iteration_bounds = array<i64: 2>, scalar_prefetch = 0 : i64, scratch_operands = 0 : i64, tpu.core_type = #tpu.core_type<tc>, window_params = [{transform_indices = @transform_0, window_bounds = array<i64: 1, 16, 32>}, {transform_indices = @transform_1, window_bounds = array<i64: 1, 16, 32>}, {pipeline_mode = #tpu.pipeline_mode<synchronous>, transform_indices = @transform_2, window_bounds = array<i64: 32, 96>}, {pipeline_mode = #tpu.pipeline_mode<synchronous>, transform_indices = @transform_3, window_bounds = array<i64: 1, 96>}, {pipeline_mode = #tpu.pipeline_mode<synchronous>, transform_indices = @transform_4, window_bounds = array<i64: 4, 8, 32>}, {pipeline_mode = #tpu.pipeline_mode<synchronous>, transform_indices = @transform_5, window_bounds = array<i64: 1, 32>}, {pipeline_mode = #tpu.pipeline_mode<synchronous>, transform_indices = @transform_6, window_bounds = array<i64: 1, 32>}, {pipeline_mode = #tpu.pipeline_mode<synchronous>, transform_indices = @transform_7, window_bounds = array<i64: 1, 32>}, {pipeline_mode = #tpu.pipeline_mode<synchronous>, transform_indices = @transform_8, window_bounds = array<i64: 32, 64>}, {pipeline_mode = #tpu.pipeline_mode<synchronous>, transform_indices = @transform_9, window_bounds = array<i64: 1, 64>}, {pipeline_mode = #tpu.pipeline_mode<synchronous>, transform_indices = @transform_10, window_bounds = array<i64: 64, 32>}, {pipeline_mode = #tpu.pipeline_mode<synchronous>, transform_indices = @transform_11, window_bounds = array<i64: 1, 32>}, {pipeline_mode = #tpu.pipeline_mode<synchronous>, transform_indices = @transform_12, window_bounds = array<i64: 1, 32>}, {pipeline_mode = #tpu.pipeline_mode<synchronous>, transform_indices = @transform_13, window_bounds = array<i64: 1, 32>}, {transform_indices = @transform_14, window_bounds = array<i64: 1, 16, 32>}]} {
    %c0 = arith.constant 0 : index
    %c0_0 = arith.constant 0 : index
    %c0_1 = arith.constant 0 : index
    %0 = vector.load %arg1[%c0, %c0_0, %c0_1] : memref<1x16x32xf32, #tpu.memory_space<vmem>>, vector<1x16x32xf32>
    %1 = vector.shape_cast %0 : vector<1x16x32xf32> to vector<16x32xf32>
    %c0_2 = arith.constant 0 : index
    %c0_3 = arith.constant 0 : index
    %2 = vector.load %arg3[%c0_2, %c0_3] : memref<32x96xf32, #tpu.memory_space<vmem>>, vector<32x96xf32>
    %c0_4 = arith.constant 0 : index
    %c0_5 = arith.constant 0 : index
    %3 = vector.load %arg4[%c0_4, %c0_5] : memref<1x96xf32, #tpu.memory_space<vmem>>, vector<1x96xf32>
    %c0_6 = arith.constant 0 : index
    %c0_7 = arith.constant 0 : index
    %c0_8 = arith.constant 0 : index
    %4 = vector.load %arg2[%c0_6, %c0_7, %c0_8] : memref<1x16x32xf32, #tpu.memory_space<vmem>>, vector<1x16x32xf32>
    %5 = vector.shape_cast %4 : vector<1x16x32xf32> to vector<16x32xf32>
    %6 = arith.addf %1, %5 : vector<16x32xf32>
    %7 = vector.extract_strided_slice %2 {offsets = [0, 0], sizes = [32, 64], strides = [1, 1]} : vector<32x96xf32> to vector<32x64xf32>
    %cst = arith.constant dense<0.000000e+00> : vector<16x64xf32>
    %8 = tpu.matmul %6, %7, %cst {dimension_numbers = #tpu.dot_dimension_numbers<[1], [0], [0], [1], [0, 0, 1, 1], [], []>} : vector<16x32xf32>, vector<32x64xf32>, vector<16x64xf32> -> vector<16x64xf32>
    %9 = vector.extract_strided_slice %3 {offsets = [0, 0], sizes = [1, 64], strides = [1, 1]} : vector<1x96xf32> to vector<1x64xf32>
    %10 = vector.broadcast %9 : vector<1x64xf32> to vector<16x64xf32>
    %11 = arith.addf %8, %10 : vector<16x64xf32>
    %12 = vector.extract_strided_slice %2 {offsets = [0, 64], sizes = [32, 32], strides = [1, 1]} : vector<32x96xf32> to vector<32x32xf32>
    %cst_9 = arith.constant dense<0.000000e+00> : vector<16x32xf32>
    %13 = tpu.matmul %1, %12, %cst_9 {dimension_numbers = #tpu.dot_dimension_numbers<[1], [0], [0], [1], [0, 0, 1, 1], [], []>} : vector<16x32xf32>, vector<32x32xf32>, vector<16x32xf32> -> vector<16x32xf32>
    %14 = vector.extract_strided_slice %3 {offsets = [0, 64], sizes = [1, 32], strides = [1, 1]} : vector<1x96xf32> to vector<1x32xf32>
    %15 = vector.broadcast %14 : vector<1x32xf32> to vector<16x32xf32>
    %16 = arith.addf %13, %15 : vector<16x32xf32>
    %17 = vector.extract_strided_slice %11 {offsets = [0, 0], sizes = [16, 32], strides = [1, 1]} : vector<16x64xf32> to vector<16x32xf32>
    %18 = vector.extract_strided_slice %11 {offsets = [0, 32], sizes = [16, 32], strides = [1, 1]} : vector<16x64xf32> to vector<16x32xf32>
    %19 = vector.extract_strided_slice %17 {offsets = [0, 0], sizes = [16, 8], strides = [1, 1]} : vector<16x32xf32> to vector<16x8xf32>
    %20 = vector.extract_strided_slice %17 {offsets = [0, 8], sizes = [16, 8], strides = [1, 1]} : vector<16x32xf32> to vector<16x8xf32>
    %21 = vector.extract_strided_slice %17 {offsets = [0, 16], sizes = [16, 8], strides = [1, 1]} : vector<16x32xf32> to vector<16x8xf32>
    %22 = vector.extract_strided_slice %17 {offsets = [0, 24], sizes = [16, 8], strides = [1, 1]} : vector<16x32xf32> to vector<16x8xf32>
    %23 = vector.shape_cast %19 : vector<16x8xf32> to vector<1x16x8xf32>
    %24 = vector.shape_cast %20 : vector<16x8xf32> to vector<1x16x8xf32>
    %25 = vector.shape_cast %21 : vector<16x8xf32> to vector<1x16x8xf32>
    %26 = vector.shape_cast %22 : vector<16x8xf32> to vector<1x16x8xf32>
    %27 = tpu.concatenate %23, %24, %25, %26 in 0 : vector<1x16x8xf32>, vector<1x16x8xf32>, vector<1x16x8xf32>, vector<1x16x8xf32> -> vector<4x16x8xf32>
    %28 = vector.extract_strided_slice %18 {offsets = [0, 0], sizes = [16, 8], strides = [1, 1]} : vector<16x32xf32> to vector<16x8xf32>
    %29 = vector.extract_strided_slice %18 {offsets = [0, 8], sizes = [16, 8], strides = [1, 1]} : vector<16x32xf32> to vector<16x8xf32>
    %30 = vector.extract_strided_slice %18 {offsets = [0, 16], sizes = [16, 8], strides = [1, 1]} : vector<16x32xf32> to vector<16x8xf32>
    %31 = vector.extract_strided_slice %18 {offsets = [0, 24], sizes = [16, 8], strides = [1, 1]} : vector<16x32xf32> to vector<16x8xf32>
    %32 = vector.shape_cast %28 : vector<16x8xf32> to vector<1x16x8xf32>
    %33 = vector.shape_cast %29 : vector<16x8xf32> to vector<1x16x8xf32>
    %34 = vector.shape_cast %30 : vector<16x8xf32> to vector<1x16x8xf32>
    %35 = vector.shape_cast %31 : vector<16x8xf32> to vector<1x16x8xf32>
    %36 = tpu.concatenate %32, %33, %34, %35 in 0 : vector<1x16x8xf32>, vector<1x16x8xf32>, vector<1x16x8xf32>, vector<1x16x8xf32> -> vector<4x16x8xf32>
    %37 = vector.extract_strided_slice %16 {offsets = [0, 0], sizes = [16, 8], strides = [1, 1]} : vector<16x32xf32> to vector<16x8xf32>
    %38 = vector.extract_strided_slice %16 {offsets = [0, 8], sizes = [16, 8], strides = [1, 1]} : vector<16x32xf32> to vector<16x8xf32>
    %39 = vector.extract_strided_slice %16 {offsets = [0, 16], sizes = [16, 8], strides = [1, 1]} : vector<16x32xf32> to vector<16x8xf32>
    %40 = vector.extract_strided_slice %16 {offsets = [0, 24], sizes = [16, 8], strides = [1, 1]} : vector<16x32xf32> to vector<16x8xf32>
    %41 = vector.shape_cast %37 : vector<16x8xf32> to vector<1x16x8xf32>
    %42 = vector.shape_cast %38 : vector<16x8xf32> to vector<1x16x8xf32>
    %43 = vector.shape_cast %39 : vector<16x8xf32> to vector<1x16x8xf32>
    %44 = vector.shape_cast %40 : vector<16x8xf32> to vector<1x16x8xf32>
    %45 = tpu.concatenate %41, %42, %43, %44 in 0 : vector<1x16x8xf32>, vector<1x16x8xf32>, vector<1x16x8xf32>, vector<1x16x8xf32> -> vector<4x16x8xf32>
    "tpu.trace_start"() <{level = 10 : i32, message = "hqd,hkd->hqk"}> : () -> ()
    %cst_10 = arith.constant dense<0.000000e+00> : vector<4x16x16xf32>
    %46 = tpu.matmul %27, %36, %cst_10 {dimension_numbers = #tpu.dot_dimension_numbers<[2], [2], [1], [1], [0, 0, 0, 1, 1, 1], [0], [0]>} : vector<4x16x8xf32>, vector<4x16x8xf32>, vector<4x16x16xf32> -> vector<4x16x16xf32>
    "tpu.trace_stop"() : () -> ()
    %cst_11 = arith.constant dense<0xFF800000> : vector<4x16xf32>
    %47 = vector.multi_reduction <maximumf>, %46, %cst_11 [2] : vector<4x16x16xf32> to vector<4x16xf32>
    %48 = vector.shape_cast %47 : vector<4x16xf32> to vector<4x16x1xf32>
    %49 = vector.broadcast %48 : vector<4x16x1xf32> to vector<4x16x16xf32>
    %50 = arith.subf %46, %49 : vector<4x16x16xf32>
    %51 = math.exp %50 : vector<4x16x16xf32>
    %cst_12 = arith.constant dense<0.000000e+00> : vector<4x16xf32>
    %52 = vector.multi_reduction <add>, %51, %cst_12 [2] : vector<4x16x16xf32> to vector<4x16xf32>
    %53 = vector.shape_cast %52 : vector<4x16xf32> to vector<4x16x1xf32>
    %54 = tpu.reciprocal %53 {approx = true} : vector<4x16x1xf32> -> vector<4x16x1xf32>
    %55 = vector.broadcast %54 : vector<4x16x1xf32> to vector<4x16x16xf32>
    %56 = arith.mulf %51, %55 : vector<4x16x16xf32>
    "tpu.trace_start"() <{level = 10 : i32, message = "hqk,hkd->hqd"}> : () -> ()
    %cst_13 = arith.constant dense<0.000000e+00> : vector<4x16x8xf32>
    %57 = tpu.matmul %56, %45, %cst_13 {dimension_numbers = #tpu.dot_dimension_numbers<[2], [1], [1], [2], [0, 0, 0, 1, 1, 2], [0], [0]>} : vector<4x16x16xf32>, vector<4x16x8xf32>, vector<4x16x8xf32> -> vector<4x16x8xf32>
    "tpu.trace_stop"() : () -> ()
    %c0_14 = arith.constant 0 : index
    %c0_15 = arith.constant 0 : index
    %c0_16 = arith.constant 0 : index
    %58 = vector.load %arg5[%c0_14, %c0_15, %c0_16] : memref<4x8x32xf32, #tpu.memory_space<vmem>>, vector<4x8x32xf32>
    "tpu.trace_start"() <{level = 10 : i32, message = "hqd,hdo->hqo"}> : () -> ()
    %cst_17 = arith.constant dense<0.000000e+00> : vector<4x16x32xf32>
    %59 = tpu.matmul %57, %58, %cst_17 {dimension_numbers = #tpu.dot_dimension_numbers<[2], [1], [1], [2], [0, 0, 0, 1, 1, 2], [0], [0]>} : vector<4x16x8xf32>, vector<4x8x32xf32>, vector<4x16x32xf32> -> vector<4x16x32xf32>
    "tpu.trace_stop"() : () -> ()
    %cst_18 = arith.constant dense<0.000000e+00> : vector<16x32xf32>
    %60 = vector.multi_reduction <add>, %59, %cst_18 [0] : vector<4x16x32xf32> to vector<16x32xf32>
    %c0_19 = arith.constant 0 : index
    %c0_20 = arith.constant 0 : index
    %61 = vector.load %arg6[%c0_19, %c0_20] : memref<1x32xf32, #tpu.memory_space<vmem>>, vector<1x32xf32>
    %62 = vector.broadcast %61 : vector<1x32xf32> to vector<16x32xf32>
    %63 = arith.addf %60, %62 : vector<16x32xf32>
    %64 = arith.addf %1, %63 : vector<16x32xf32>
    %c0_21 = arith.constant 0 : index
    %c0_22 = arith.constant 0 : index
    %65 = vector.load %arg7[%c0_21, %c0_22] : memref<1x32xf32, #tpu.memory_space<vmem>>, vector<1x32xf32>
    %c0_23 = arith.constant 0 : index
    %c0_24 = arith.constant 0 : index
    %66 = vector.load %arg8[%c0_23, %c0_24] : memref<1x32xf32, #tpu.memory_space<vmem>>, vector<1x32xf32>
    %cst_25 = arith.constant dense<0.000000e+00> : vector<16xf32>
    %67 = vector.multi_reduction <add>, %64, %cst_25 [1] : vector<16x32xf32> to vector<16xf32>
    %68 = vector.shape_cast %67 : vector<16xf32> to vector<16x1xf32>
    %cst_26 = arith.constant 3.200000e+01 : f32
    %69 = vector.broadcast %cst_26 : f32 to vector<16x1xf32>
    %70 = arith.divf %68, %69 : vector<16x1xf32>
    %71 = vector.broadcast %70 : vector<16x1xf32> to vector<16x32xf32>
    %72 = arith.subf %64, %71 : vector<16x32xf32>
    %73 = arith.mulf %72, %72 : vector<16x32xf32>
    %cst_27 = arith.constant dense<0.000000e+00> : vector<16xf32>
    %74 = vector.multi_reduction <add>, %73, %cst_27 [1] : vector<16x32xf32> to vector<16xf32>
    %75 = vector.shape_cast %74 : vector<16xf32> to vector<16x1xf32>
    %cst_28 = arith.constant 3.200000e+01 : f32
    %76 = vector.broadcast %cst_28 : f32 to vector<16x1xf32>
    %77 = arith.divf %75, %76 : vector<16x1xf32>
    %78 = vector.broadcast %70 : vector<16x1xf32> to vector<16x32xf32>
    %79 = arith.subf %64, %78 : vector<16x32xf32>
    %cst_29 = arith.constant 9.99999974E-6 : f32
    %80 = vector.broadcast %cst_29 : f32 to vector<16x1xf32>
    %81 = arith.addf %77, %80 : vector<16x1xf32>
    %82 = math.rsqrt %81 : vector<16x1xf32>
    %83 = vector.broadcast %82 : vector<16x1xf32> to vector<16x32xf32>
    %84 = arith.mulf %79, %83 : vector<16x32xf32>
    %85 = vector.broadcast %65 : vector<1x32xf32> to vector<16x32xf32>
    %86 = arith.mulf %84, %85 : vector<16x32xf32>
    %87 = vector.broadcast %66 : vector<1x32xf32> to vector<16x32xf32>
    %88 = arith.addf %86, %87 : vector<16x32xf32>
    %c0_30 = arith.constant 0 : index
    %c0_31 = arith.constant 0 : index
    %89 = vector.load %arg9[%c0_30, %c0_31] : memref<32x64xf32, #tpu.memory_space<vmem>>, vector<32x64xf32>
    %cst_32 = arith.constant dense<0.000000e+00> : vector<16x64xf32>
    %90 = tpu.matmul %88, %89, %cst_32 {dimension_numbers = #tpu.dot_dimension_numbers<[1], [0], [0], [1], [0, 0, 1, 1], [], []>} : vector<16x32xf32>, vector<32x64xf32>, vector<16x64xf32> -> vector<16x64xf32>
    %c0_33 = arith.constant 0 : index
    %c0_34 = arith.constant 0 : index
    %91 = vector.load %arg10[%c0_33, %c0_34] : memref<1x64xf32, #tpu.memory_space<vmem>>, vector<1x64xf32>
    %92 = vector.broadcast %91 : vector<1x64xf32> to vector<16x64xf32>
    %93 = arith.addf %90, %92 : vector<16x64xf32>
    %cst_35 = arith.constant 0.000000e+00 : f32
    %94 = vector.broadcast %cst_35 : f32 to vector<16x64xf32>
    %95 = arith.maximumf %93, %94 : vector<16x64xf32>
    %c0_36 = arith.constant 0 : index
    %c0_37 = arith.constant 0 : index
    %96 = vector.load %arg11[%c0_36, %c0_37] : memref<64x32xf32, #tpu.memory_space<vmem>>, vector<64x32xf32>
    %cst_38 = arith.constant dense<0.000000e+00> : vector<16x32xf32>
    %97 = tpu.matmul %95, %96, %cst_38 {dimension_numbers = #tpu.dot_dimension_numbers<[1], [0], [0], [1], [0, 0, 1, 1], [], []>} : vector<16x64xf32>, vector<64x32xf32>, vector<16x32xf32> -> vector<16x32xf32>
    %c0_39 = arith.constant 0 : index
    %c0_40 = arith.constant 0 : index
    %98 = vector.load %arg12[%c0_39, %c0_40] : memref<1x32xf32, #tpu.memory_space<vmem>>, vector<1x32xf32>
    %99 = vector.broadcast %98 : vector<1x32xf32> to vector<16x32xf32>
    %100 = arith.addf %97, %99 : vector<16x32xf32>
    %101 = arith.addf %88, %100 : vector<16x32xf32>
    %c0_41 = arith.constant 0 : index
    %c0_42 = arith.constant 0 : index
    %102 = vector.load %arg13[%c0_41, %c0_42] : memref<1x32xf32, #tpu.memory_space<vmem>>, vector<1x32xf32>
    %c0_43 = arith.constant 0 : index
    %c0_44 = arith.constant 0 : index
    %103 = vector.load %arg14[%c0_43, %c0_44] : memref<1x32xf32, #tpu.memory_space<vmem>>, vector<1x32xf32>
    %cst_45 = arith.constant dense<0.000000e+00> : vector<16xf32>
    %104 = vector.multi_reduction <add>, %101, %cst_45 [1] : vector<16x32xf32> to vector<16xf32>
    %105 = vector.shape_cast %104 : vector<16xf32> to vector<16x1xf32>
    %cst_46 = arith.constant 3.200000e+01 : f32
    %106 = vector.broadcast %cst_46 : f32 to vector<16x1xf32>
    %107 = arith.divf %105, %106 : vector<16x1xf32>
    %108 = vector.broadcast %107 : vector<16x1xf32> to vector<16x32xf32>
    %109 = arith.subf %101, %108 : vector<16x32xf32>
    %110 = arith.mulf %109, %109 : vector<16x32xf32>
    %cst_47 = arith.constant dense<0.000000e+00> : vector<16xf32>
    %111 = vector.multi_reduction <add>, %110, %cst_47 [1] : vector<16x32xf32> to vector<16xf32>
    %112 = vector.shape_cast %111 : vector<16xf32> to vector<16x1xf32>
    %cst_48 = arith.constant 3.200000e+01 : f32
    %113 = vector.broadcast %cst_48 : f32 to vector<16x1xf32>
    %114 = arith.divf %112, %113 : vector<16x1xf32>
    %115 = vector.broadcast %107 : vector<16x1xf32> to vector<16x32xf32>
    %116 = arith.subf %101, %115 : vector<16x32xf32>
    %cst_49 = arith.constant 9.99999974E-6 : f32
    %117 = vector.broadcast %cst_49 : f32 to vector<16x1xf32>
    %118 = arith.addf %114, %117 : vector<16x1xf32>
    %119 = math.rsqrt %118 : vector<16x1xf32>
    %120 = vector.broadcast %119 : vector<16x1xf32> to vector<16x32xf32>
    %121 = arith.mulf %116, %120 : vector<16x32xf32>
    %122 = vector.broadcast %102 : vector<1x32xf32> to vector<16x32xf32>
    %123 = arith.mulf %121, %122 : vector<16x32xf32>
    %124 = vector.broadcast %103 : vector<1x32xf32> to vector<16x32xf32>
    %125 = arith.addf %123, %124 : vector<16x32xf32>
    %c0_50 = arith.constant 0 : index
    %c0_51 = arith.constant 0 : index
    %c0_52 = arith.constant 0 : index
    %126 = vector.load %arg15[%c0_50, %c0_51, %c0_52] : memref<1x16x32xf32, #tpu.memory_space<vmem>>, vector<1x16x32xf32>
    %127 = vector.shape_cast %126 : vector<1x16x32xf32> to vector<16x32xf32>
    %128 = vector.shape_cast %125 : vector<16x32xf32> to vector<1x16x32xf32>
    tpu.vector_store %arg15[%c0_50, %c0_51, %c0_52], %128 {strides = array<i32>} : memref<1x16x32xf32, #tpu.memory_space<vmem>>, vector<1x16x32xf32>,
    return
  }
  func.func @transform_0(%arg0: i32) -> (i32, i32, i32) {
    %c0_i32 = arith.constant 0 : i32
    %c0_i32_0 = arith.constant 0 : i32
    %c0_i32_1 = arith.constant 0 : i32
    return %arg0, %c0_i32, %c0_i32_0 : i32, i32, i32
  }
  func.func @transform_1(%arg0: i32) -> (i32, i32, i32) {
    %c0_i32 = arith.constant 0 : i32
    %c0_i32_0 = arith.constant 0 : i32
    %c0_i32_1 = arith.constant 0 : i32
    return %arg0, %c0_i32, %c0_i32_0 : i32, i32, i32
  }
  func.func @transform_2(%arg0: i32) -> (i32, i32) {
    %c0_i32 = arith.constant 0 : i32
    %c0_i32_0 = arith.constant 0 : i32
    %c0_i32_1 = arith.constant 0 : i32
    return %c0_i32, %c0_i32_0 : i32, i32
  }
  func.func @transform_3(%arg0: i32) -> (i32, i32) {
    %c0_i32 = arith.constant 0 : i32
    %c0_i32_0 = arith.constant 0 : i32
    %c0_i32_1 = arith.constant 0 : i32
    return %c0_i32, %c0_i32_0 : i32, i32
  }
  func.func @transform_4(%arg0: i32) -> (i32, i32, i32) {
    %c0_i32 = arith.constant 0 : i32
    %c0_i32_0 = arith.constant 0 : i32
    %c0_i32_1 = arith.constant 0 : i32
    %c0_i32_2 = arith.constant 0 : i32
    return %c0_i32, %c0_i32_0, %c0_i32_1 : i32, i32, i32
  }
  func.func @transform_5(%arg0: i32) -> (i32, i32) {
    %c0_i32 = arith.constant 0 : i32
    %c0_i32_0 = arith.constant 0 : i32
    %c0_i32_1 = arith.constant 0 : i32
    return %c0_i32, %c0_i32_0 : i32, i32
  }
  func.func @transform_6(%arg0: i32) -> (i32, i32) {
    %c0_i32 = arith.constant 0 : i32
    %c0_i32_0 = arith.constant 0 : i32
    %c0_i32_1 = arith.constant 0 : i32
    return %c0_i32, %c0_i32_0 : i32, i32
  }
  func.func @transform_7(%arg0: i32) -> (i32, i32) {
    %c0_i32 = arith.constant 0 : i32
    %c0_i32_0 = arith.constant 0 : i32
    %c0_i32_1 = arith.constant 0 : i32
    return %c0_i32, %c0_i32_0 : i32, i32
  }
  func.func @transform_8(%arg0: i32) -> (i32, i32) {
    %c0_i32 = arith.constant 0 : i32
    %c0_i32_0 = arith.constant 0 : i32
    %c0_i32_1 = arith.constant 0 : i32
    return %c0_i32, %c0_i32_0 : i32, i32
  }
  func.func @transform_9(%arg0: i32) -> (i32, i32) {
    %c0_i32 = arith.constant 0 : i32
    %c0_i32_0 = arith.constant 0 : i32
    %c0_i32_1 = arith.constant 0 : i32
    return %c0_i32, %c0_i32_0 : i32, i32
  }
  func.func @transform_10(%arg0: i32) -> (i32, i32) {
    %c0_i32 = arith.constant 0 : i32
    %c0_i32_0 = arith.constant 0 : i32
    %c0_i32_1 = arith.constant 0 : i32
    return %c0_i32, %c0_i32_0 : i32, i32
  }
  func.func @transform_11(%arg0: i32) -> (i32, i32) {
    %c0_i32 = arith.constant 0 : i32
    %c0_i32_0 = arith.constant 0 : i32
    %c0_i32_1 = arith.constant 0 : i32
    return %c0_i32, %c0_i32_0 : i32, i32
  }
  func.func @transform_12(%arg0: i32) -> (i32, i32) {
    %c0_i32 = arith.constant 0 : i32
    %c0_i32_0 = arith.constant 0 : i32
    %c0_i32_1 = arith.constant 0 : i32
    return %c0_i32, %c0_i32_0 : i32, i32
  }
  func.func @transform_13(%arg0: i32) -> (i32, i32) {
    %c0_i32 = arith.constant 0 : i32
    %c0_i32_0 = arith.constant 0 : i32
    %c0_i32_1 = arith.constant 0 : i32
    return %c0_i32, %c0_i32_0 : i32, i32
  }
  func.func @transform_14(%arg0: i32) -> (i32, i32, i32) {
    %c0_i32 = arith.constant 0 : i32
    %c0_i32_0 = arith.constant 0 : i32
    %c0_i32_1 = arith.constant 0 : i32
    return %arg0, %c0_i32, %c0_i32_0 : i32, i32, i32
  }
}

</mosaic_0001>

<bundles_post_ra>
// kernel: tpu_custom_call.1
= control target key start
LH: loop header
LB: loop body
LE: loop exit
PB: predicated region body
PF: predicated region fallthrough
CT: control target
= control target key end

     0   :  { %s3335_s0 = inlined_call_operand.vmem [shape: f32[2,16,32], index: 0, kind: input, shape index: {}]   ;;  %s3336_s1 = inlined_call_operand.vmem [shape: f32[2,16,32], index: 1, kind: input, shape index: {}]   ;;  %s3337_s2 = inlined_call_operand.vmem [shape: f32[32,96], index: 2, kind: input, shape index: {}]   ;;  %s3338_s3 = inlined_call_operand.vmem [shape: f32[1,96], index: 3, kind: input, shape index: {}]   ;;  %s3339_s4 = inlined_call_operand.hbm [shape: f32[4,8,32], index: 4, kind: input, shape index: {}]   ;;  %s3340_s5 = inlined_call_operand.vmem [shape: f32[1,32], index: 5, kind: input, shape index: {}]   ;;  %s3341_s6 = inlined_call_operand.vmem [shape: f32[1,32], index: 6, kind: input, shape index: {}]   ;;  %s3342_s7 = inlined_call_operand.vmem [shape: f32[1,32], index: 7, kind: input, shape index: {}]   ;;  %s3343_s8 = inlined_call_operand.hbm [shape: f32[32,64], index: 8, kind: input, shape index: {}]   ;;  %s3344_s9 = inlined_call_operand.vmem [shape: f32[1,64], index: 9, kind: input, shape index: {}]   ;;  %s3345_s10 = inlined_call_operand.vmem [shape: f32[64,32], index: 10, kind: input, shape index: {}]   ;;  %s3346_s11 = inlined_call_operand.vmem [shape: f32[1,32], index: 11, kind: input, shape index: {}]   ;;  %s3347_s12 = inlined_call_operand.vmem [shape: f32[1,32], index: 12, kind: input, shape index: {}]   ;;  %s3348_s13 = inlined_call_operand.vmem [shape: f32[1,32], index: 13, kind: input, shape index: {}]   ;;  %s3349_s14 = inlined_call_operand.hbm [shape: f32[2,16,32], index: 14, kind: output, shape index: {}]  }
   0x1   :  { %3362 = sst [smem:[#allocation18_spill]] %s3349_s14 }
   0x2   :  { %19 = vsyncpa [#allocation3], 0 }
   0x3   :  { %20 = vsyncpa [#allocation6], 0 }
   0x4   :  { %21 = vsyncpa [#allocation4], 0 }
   0x5   :  { %23 = vsyncpa [#allocation4 + $0x1], 0  ;;  %s2976_s29 = smov 0   ;;  %s2978_s30 = smov 0  }
   0x6   :  { %s2980_s15 = smov 0   ;;  %s2982_s16 = smov 0  }
   0x7 LB: > { %3363 = sst [smem:[#allocation11_spill]] %s2875_s29  ;;  %s2997_s17 = sadd.s32 4294967295, %s2887_s16   ;;  %s2887_s16 = sphi %s2982_s16, %s3388_s16   ;;  %s2883_s15 = sphi %s2980_s15, %s3390_s15   ;;  %s2879_s30 = sphi %s2978_s30, %s3392_s30   ;;  %s2875_s29 = sphi %s2976_s29, %s3391_s29  }
   0x8   : > { %3364 = sst [smem:[#allocation12_spill]] %s2883_s15  ;;  %s2258_s18 = sadd.s32 4294967294, %s2887_s16  }
   0x9   : > { %3365 = sst [smem:[#allocation13_spill]] %s2887_s16  ;;  %s3001_s19 = sadd.s32 1, %s2887_s16  }
   0xa   : > { %3366 = sst [smem:[#allocation14_spill]] %s3001_s19  ;;  %s340_s20 = sadd.s32 1, %s2883_s15 }
   0xb   : > { %s337_s21 = ssub.s32 %s2887_s16, %s3001_s19  ;;  %p350_p0 = scmp.ne.s32.totalorder %s2883_s15, %s2879_s30 }
   0xc   : > { %p338_p1 = scmp.eq.s32.totalorder %s337_s21, 0  ;;  %p351_p2 = scmp.eq.s32.totalorder %s2997_s17, 1 }
   0xd   : > { %p356_p3 = scmp.ne.s32.totalorder %s2879_s30, %s2875_s29  ;;  %p357_p4 = scmp.eq.s32.totalorder %s2258_s18, 1 }
   0xe   : > { %s3012_s22 = scalar_select %p338_p1, %s2883_s15, %s340_s20  }
   0xf   : > { %p3014_p5 = por %p351_p2, %p350_p0  ;;  %p3018_p6 = por %p357_p4, %p356_p3 }
  0x10   : > { %3367 = sst [smem:[#allocation15_spill]] %s3012_s22  ;;  %p2259_p7 = scmp.ge.s32.totalorder %s2887_s16, 1 }
  0x11   : > { %s3368_s23 = scalar_select %p3014_p5, 1, 0 }
  0x12   : > { %s3370_s24 = scalar_select %p3018_p6, 1, 0 }
  0x13   : > { %3369 = sst [smem:[#allocation16_spill]] %s3368_s23  ;;  %p364_p8 = scmp.lt.s32.totalorder %s2887_s16, 3 }
  0x14   : > { %3371 = sst [smem:[#allocation17_spill]] %s3370_s24  ;;  %p3355_p9 = scmp.eq.s32.totalorder %s2997_s17, 0 }
  0x15   : > { %p3025_p10 = pnand %p2259_p7, %p364_p8  ;;  %s2889_s26 = smov [#allocation2]  }
  0x16   : > { %s382_s27 = sshll.u32 %s2889_s26, 4  ;;  %s2890_s18 = smov [#allocation5]   ;;  %s383_s27 = int_to_ptr.vmem [resolvable:$true] %s382_s27 }
  0x17   : > { %s3372_s25 = scalar_select %p3025_p10, 1, 0 }
  0x18   : > { %p2617_p11 = pneg %p3025_p10  ;;  %s404_s20 = sshll.u32 %s2890_s18, 4  ;;  %s3037_s20 = int_to_ptr.vmem [resolvable:$true] %s404_s20 }
  0x19   : > { %s2761_s15 = scalar_lea.hbm %s3339_s4, 512 }
  0x1a   : > { %p3033_p12 = pnand %p3355_p9, %p2617_p11  ;;  %p2762_p13 = scmp.ne.s32.totalorder %s3339_s4, %s2761_s15 }
  0x1b   : > { %p2768_p3 = scmp.lt.u32.totalorder %s2761_s15, %s3339_s4 }
  0x1c   : > { %p2763_p0 = pneg %p3033_p12 }
  0x1e   : > { %p2764_p1 = pnand %p2763_p0, %p2762_p13 }
  0x20   : > { %p2765_p2 = pneg %p2764_p1 }
  0x22   : > { %p2770_p4 = pnand %p2768_p3, %p2765_p2 }
  0x24   : > { %2773 = shalt.err (!%p2770_p4)
}
  0x25   : > { %s2774_s18 = scalar_lea.vmem %s383_s27, 512  ;;  %p2782_p9 = scmp.lt.s32.totalorder %s383_s27, %s383_s27 }
  0x26   : > { %p2775_p7 = scmp.ne.s32.totalorder %s383_s27, %s2774_s18  ;;  %p2783_p6 = scmp.lt.s32.totalorder %s2774_s18, %s2774_s18 }
  0x28   : > { %p2777_p8 = pnand %p2775_p7, %p2763_p0  ;;  %p2784_p5 = por %p2783_p6, %p2782_p9 }
  0x2a   : > { %p2778_p11 = pneg %p2777_p8 }
  0x2c   : > { %p2785_p10 = pnand %p2784_p5, %p2778_p11 }
  0x2e   : > { %2788 = shalt.err (!%p2785_p10)
}
  0x2f   : > { %s2891_s19 = smov 128   ;;  %s2892_s22 = smov 8  }
  0x30   : > { %2620 = dma.hbm_to_vmem [thread:$0]  (!%p3033_p12), %s3339_s4, 512, %s383_s27, [#allocation3], %s2891_s19, %s2891_s19, %s2892_s22  }
  0x31   : > { %s2789_s26 = scalar_lea.hbm %s3343_s8, 512 }
  0x32   : > { %p2790_p13 = scmp.ne.s32.totalorder %s3343_s8, %s2789_s26  ;;  %p2796_p9 = scmp.lt.u32.totalorder %s2789_s26, %s3343_s8 }
  0x34   : > { %p2792_p5 = pnand %p2790_p13, %p2763_p0 }
  0x36   : > { %p2793_p6 = pneg %p2792_p5 }
  0x38   : > { %p2798_p10 = pnand %p2796_p9, %p2793_p6 }
  0x3a   : > { %2801 = shalt.err (!%p2798_p10)
}
  0x3b   : > { %s2802_s27 = scalar_lea.vmem %s3037_s20, 512  ;;  %p2810_p4 = scmp.lt.s32.totalorder %s3037_s20, %s3037_s20 }
  0x3c   : > { %p2803_p1 = scmp.ne.s32.totalorder %s3037_s20, %s2802_s27  ;;  %p2811_p7 = scmp.lt.s32.totalorder %s2802_s27, %s2802_s27 }
  0x3e   : > { %p2805_p2 = pnand %p2803_p1, %p2763_p0  ;;  %p2812_p8 = por %p2811_p7, %p2810_p4 }
  0x40   : > { %p2806_p3 = pneg %p2805_p2 }
  0x42   : > { %p2813_p11 = pnand %p2812_p8, %p2806_p3 }
  0x44   : > { %2816 = shalt.err (!%p2813_p11)
}
  0x45   : > { %2623 = dma.hbm_to_vmem [thread:$0]  (!%p3033_p12), %s3343_s8, 512, %s3037_s20, [#allocation6], %s2891_s19, %s2891_s19, %s2892_s22  }
  0x46   : > { %p3374_p13 = scmp.ne.s32.totalorder %s3372_s25, 0 }
  0x47   : > { %p3375_p5 = scmp.eq.s32.totalorder (!%p3374_p13), %s2997_s17, 0 }
  0x48   : > { %451 = sbr.rel (%p3374_p13) target bundleno = 2659 (0xa63), region = 76 }
  0x4f   : > { %2862 = dma.done.wait (%p3375_p5), [#allocation3], 512   ;;  %p3376_p0 = pmov %p3375_p5 }
  0x51   : > { %2864 = vsyncadd (%p3376_p0), [#allocation3], 4294966784  ;;  %p3377_p6 = pmov %p3376_p0 }
  0x52   : > { %p3378_p9 = pmov %p3376_p0 }
  0x53   : > { %2866 = dma.done.wait (%p3377_p6), [#allocation6], 512  }
  0x54   : > { %2868 = vsyncadd (%p3378_p9), [#allocation6], 4294966784  ;;  %p506_p10 = scmp.lt.s32.totalorder %s2997_s17, 1  ;;  %v518_v0 = vld [vmem:[%s3337_s2] sm:$0xff]  ;;  %v519_v1 = vld [vmem:[%s3337_s2 + $0x8] sm:$0xff]  ;;  %vm533_vm0 = vcmask 261120  }
  0x55   : > { %v520_v2 = vld [vmem:[%s3337_s2 + $0x10] sm:$0xff]  ;;  %v2676_v3 = vpack.i.bf16 %v519_v1, %v518_v0  ;;  %v2527_v4 = vpack.c.bf16 %v519_v1, %v518_v0  ;;  %v521_v5 = vld [vmem:[%s3337_s2 + $0x18] sm:$0xff]  ;;  %v3129_v13 = vld [vmem:[%s3338_s3] ss:$0 sm:$0xff]  ;;  %vm753_vm1 = vcmask 64512   ;;  %s2893_s25 = smov 112  }
  0x56   : > { %s507_s23 = scalar_select %p506_p10, %s2997_s17, 1  ;;  %v2531_v7 = vpack.c.bf16 %v521_v5, %v520_v2  ;;  %v2681_v18 = vpack.i.bf16 %v521_v5, %v520_v2  ;;  %vm3144_vm2 = vmpackc.low %vm753_vm1, %vm753_vm1  ;;  %vm1098_vm3 = vcmask 130048   ;;  %vm2018_vm4 = vcmask 523264  }
  0x57   : > { %2528 = vmatprep.subr.bf16.mxu0 %v2527_v4  ;;  %s2895_s22 = smov 104   ;;  %s2896_s29 = smov 64  }
  0x58   : > { %s2324_s28 = sshll.u32 %s507_s23, 4  ;;  %2530 = vmatpush3.bf16.msra.mxu0 %v2527_v4  ;;  %s3381_s26 = sld [smem:[#allocation16_spill]] }
  0x59   : > { %s510_s19 = scalar_lea.vmem %s3335_s0, %s2324_s28  ;;  %s515_s15 = scalar_lea.vmem %s3336_s1, %s2324_s28  ;;  %2532 = vmatprep.subr.bf16.mxu0 %v2531_v7 }
  0x5a   : > { %v3116_v6 = vld [vmem:[%s510_s19] sm:$0xff]  ;;  %v3121_v10 = vld [vmem:[%s510_s19 + $0x8] sm:$0xff]  ;;  %s2894_s19 = smov 120   ;;  %s2326_s18 = sshll.u32 %s2997_s17, 8 }
  0x5b   : > { %v523_v8 = vld [vmem:[%s515_s15] sm:$0xff]  ;;  %2418 = vmatprep.mubr.msk.f32.mxu1 %vm533_vm0, %v3116_v6  ;;  %v524_v11 = vld [vmem:[%s515_s15 + $0x8] sm:$0xff]  ;;  %s2897_s15 = smov 96   ;;  %s3382_s28 = sld [smem:[#allocation18_spill]] }
  0x5c   : > { %v525_v9 = vadd.f32 %v523_v8, %v3116_v6  ;;  %v526_v12 = vadd.f32 %v524_v11, %v3121_v10  ;;  %2534 = vmatpush3.bf16.msra.mxu0 %v2531_v7 }
  0x5e   : > { %2407 = vmatprep.mubr.msk.f32.mxu0 %vm533_vm0, %v525_v9  ;;  %p3383_p1 = scmp.ne.s32.totalorder %s3381_s26, 0 }
  0x5f   : > { %2408 = vmatmul.mubr.msk.f32.vlgmr.msra.gmra.mrb[0].mxu0 %vm533_vm0, %v526_v12 }
  0x61   : > { %s3289_s20 = scalar_lea.hbm %s3382_s28, %s2326_s18 }
 0x132   : > { %v2409_v14 = vpop.f32.mrb[0].mxu0 }
 0x133   : > { %v612_v15 = vadd.f32 %v2409_v14, %v3129_v13  ;;  %v606_v16 = vpop.f32.mrb[1].mxu0 }
 0x134   : > { %v607_v17 = vadd.f32 %v3129_v13, %v606_v16 }
 0x135   : > { %723 = vrot.lane.b32.xlu1 %v612_v15, %s2893_s25 }
 0x136   : > { %717 = vrot.lane.b32.xlu0 %v607_v17, %s2894_s19  ;;  %2425 = vmatprep.mubr.msk.f32.mxu0 %vm753_vm1, %v607_v17  ;;  %v2686_v19 = vpack.i.bf16 %v612_v15, %v607_v17 }
 0x139   : > { %721 = vrot.lane.b32.xlu1 %v607_v17, %s2893_s25 }
 0x13a   : > { %719 = vrot.lane.b32.xlu0 %v612_v15, %s2894_s19 }
 0x13d   : > { %727 = vrot.lane.b32.xlu1 %v612_v15, %s2895_s22 }
 0x13e   : > { %725 = vrot.lane.b32.xlu0 %v607_v17, %s2895_s22 }
 0x141   : > { %2682 = vrot.lane.b32.xlu1 %v2681_v18, %s2896_s29 }
 0x142   : > { %2677 = vrot.lane.b32.xlu0 %v2676_v3, %s2896_s29 }
 0x146   : > { %2687 = vrot.lane.b32.xlu0 %v2686_v19, %s2897_s15 }
 0x1a7   : > { %v724_v20 = vpop.permute.xlu1 %723 }
 0x1a8   : > { %v718_v21 = vpop.permute.xlu0 %717 }
 0x1ab   : > { %v722_v22 = vpop.permute.xlu1 %721 }
 0x1ac   : > { %v2696_v23 = vpack.i.bf16 %v724_v20, %v722_v22  ;;  %v720_v24 = vpop.permute.xlu0 %719 }
 0x1ad   : > { %v2691_v25 = vpack.i.bf16 %v720_v24, %v718_v21 }
 0x1ae   : > { %2697 = vrot.lane.b32.xlu0 %v2696_v23, %s2897_s15 }
 0x1af   : > { %v728_v26 = vpop.permute.xlu1 %727  ;;  %2692 = vrot.lane.b32.xlu1 %v2691_v25, %s2897_s15 }
 0x1b0   : > { %v726_v27 = vpop.permute.xlu0 %725 }
 0x1b1   : > { %v2701_v28 = vpack.i.bf16 %v728_v26, %v726_v27 }
 0x1b3   : > { %2702 = vrot.lane.b32.xlu1 %v2701_v28, %s2897_s15  ;;  %v2683_v29 = vpop.permute.xlu1 %2682 }
 0x1b4   : > { %v2678_v30 = vpop.permute.xlu0 %2677  ;;  %v2685_v31 = vunpack.i.h.bf16 %v2683_v29  ;;  %v2684_v32 = vunpack.i.l.bf16 %v2683_v29 }
 0x1b5   : > { %v2680_v33 = vunpack.i.h.bf16 %v2678_v30  ;;  %v2679_v34 = vunpack.i.l.bf16 %v2678_v30 }
 0x1b6   : > { %v2539_v35 = vpack.c.bf16 %v2685_v31, %v2684_v32 }
 0x1b7   : > { %v2535_v36 = vpack.c.bf16 %v2680_v33, %v2679_v34 }
 0x1b8   : > { %v2688_v37 = vpop.permute.xlu0 %2687 }
 0x1b9   : > { %v2690_v38 = vunpack.i.h.bf16 %v2688_v37  ;;  %v2689_v39 = vunpack.i.l.bf16 %v2688_v37  ;;  %2536 = vmatprep.subr.bf16.mxu1 %v2535_v36 }
 0x1ba   : > { %2538 = vmatpush3.bf16.msra.mxu1 %v2535_v36 }
 0x1bb   : > { %v2543_v41 = vpack.c.bf16 %v2690_v38, %v2689_v39  ;;  %2540 = vmatprep.subr.bf16.mxu1 %v2539_v35 }
 0x1bd   : > { %2545 = vmatprep.subr.msk.bf16.mxu0 %vm3144_vm2, %v2543_v41 }
 0x1be   : > { %2542 = vmatpush3.bf16.msra.mxu1 %v2539_v35  ;;  %2548 = vmatpush3.bf16.xpose.msk.msra.mxu0 %vm3144_vm2, %v2543_v41 }
 0x1c1   : > { %2419 = vmatmul.mubr.msk.f32.vlgmr.msra.gmra.mrb[0].mxu1 %vm533_vm0, %v3121_v10 }
 0x1c2   : > { %2432 = vmatprep.mubr.msk.f32.mxu1 %vm753_vm1, %v718_v21 }
 0x1c5   : > { %2426 = vmatmul.mubr.msk.f32.vlgmr.msra.gmra.mrb[2].mxu0 %vm753_vm1, %v612_v15 }
 0x1c6   : > { %2439 = vmatprep.mubr.msk.f32.mxu0 %vm753_vm1, %v722_v22 }
 0x220   : > { %v2698_v42 = vpop.permute.xlu0 %2697 }
 0x221   : > { %v2700_v43 = vunpack.i.h.bf16 %v2698_v42  ;;  %v2699_v44 = vunpack.i.l.bf16 %v2698_v42  ;;  %v2693_v45 = vpop.permute.xlu1 %2692 }
 0x222   : > { %v2695_v46 = vunpack.i.h.bf16 %v2693_v45  ;;  %v2694_v47 = vunpack.i.l.bf16 %v2693_v45 }
 0x223   : > { %v2555_v48 = vpack.c.bf16 %v2700_v43, %v2699_v44 }
 0x224   : > { %v2549_v49 = vpack.c.bf16 %v2695_v46, %v2694_v47 }
 0x225   : > { %v2703_v50 = vpop.permute.xlu1 %2702  ;;  %2557 = vmatprep.subr.msk.bf16.mxu0 %vm3144_vm2, %v2555_v48 }
 0x226   : > { %v2705_v51 = vunpack.i.h.bf16 %v2703_v50  ;;  %v2704_v52 = vunpack.i.l.bf16 %v2703_v50  ;;  %2551 = vmatprep.subr.msk.bf16.mxu1 %vm3144_vm2, %v2549_v49  ;;  %2560 = vmatpush3.bf16.xpose.msk.msra.mxu0 %vm3144_vm2, %v2555_v48 }
 0x227   : > { %2554 = vmatpush3.bf16.xpose.msk.msra.mxu1 %vm3144_vm2, %v2549_v49 }
 0x228   : > { %v2561_v53 = vpack.c.bf16 %v2705_v51, %v2704_v52 }
 0x22a   : > { %2563 = vmatprep.subr.msk.bf16.mxu1 %vm3144_vm2, %v2561_v53 }
 0x22d   : > { %2440 = vmatmul.mubr.msk.f32.vlgmr.msra.gmra.mrb[4].mxu0 %vm753_vm1, %v724_v20 }
 0x22e   : > { %2433 = vmatmul.mubr.msk.f32.vlgmr.msra.gmra.mrb[2].mxu1 %vm753_vm1, %v720_v24 }
 0x22f   : > { %2566 = vmatpush3.bf16.xpose.msk.msra.mxu1 %vm3144_vm2, %v2561_v53  ;;  %2446 = vmatprep.mubr.msk.f32.mxu1 %vm753_vm1, %v726_v27 }
 0x236   : > { %2447 = vmatmul.mubr.msk.f32.vlgmr.msra.gmra.mrb[4].mxu1 %vm753_vm1, %v728_v26 }
 0x294   : > { %v2420_v54 = vpop.f32.mrb[0].mxu1 }
 0x295   : > { %v706_v55 = vpop.f32.mrb[1].mxu1 }
 0x298   : > { %v2427_v56 = vpop.f32.mrb[2].mxu0 }
 0x299   : > { %v828_v57 = vpop.f32.mrb[3].mxu0  ;;  %v1102_v58 = vsel %vm1098_vm3, %v2427_v56, -inf }
 0x29a   : > { %1103 = vmax.xlane.f32.xlu1 %v1102_v58  ;;  %v1099_v59 = vsel %vm1098_vm3, %v828_v57, -inf }
 0x29b   : > { %1100 = vmax.xlane.f32.xlu0 %v1099_v59 }
 0x300   : > { %v2441_v60 = vpop.f32.mrb[4].mxu0 }
 0x301   : > { %v2434_v61 = vpop.f32.mrb[2].mxu1  ;;  %v1002_v62 = vpop.f32.mrb[5].mxu0  ;;  %v1114_v5 = vsel %vm1098_vm3, %v2441_v60, -inf }
 0x302   : > { %v915_v63 = vpop.f32.mrb[3].mxu1  ;;  %v1108_v0 = vsel %vm1098_vm3, %v2434_v61, -inf  ;;  %v1111_v1 = vsel %vm1098_vm3, %v1002_v62, -inf }
 0x303   : > { %1109 = vmax.xlane.f32.xlu0 %v1108_v0  ;;  %1112 = vmax.xlane.f32.xlu1 %v1111_v1  ;;  %v1105_v2 = vsel %vm1098_vm3, %v915_v63, -inf }
 0x307   : > { %1106 = vmax.xlane.f32.xlu0 %v1105_v2 }
 0x309   : > { %v2448_v3 = vpop.f32.mrb[4].mxu1 }
 0x30a   : > { %v1089_v4 = vpop.f32.mrb[5].mxu1  ;;  %v1120_v8 = vsel %vm1098_vm3, %v2448_v3, -inf }
 0x30b   : > { %1115 = vmax.xlane.f32.xlu0 %v1114_v5  ;;  %v1117_v7 = vsel %vm1098_vm3, %v1089_v4, -inf }
 0x30c   : > { %1118 = vmax.xlane.f32.xlu1 %v1117_v7 }
 0x30f   : > { %1121 = vmax.xlane.f32.xlu0 %v1120_v8 }
 0x31d   : > { %631 = vrot.lane.b32.xlu1 %v3129_v13, %s2896_s29 }
 0x327   : > { %v1104_v9 = vpop.xlane.xlu1 %1103 }
 0x328   : > { %v1101_v13 = vpop.xlane.xlu0 %1100  ;;  %v1124_v24 = vsub.f32 %v2427_v56, %v1104_v9 }
 0x329   : > { %v1123_v27 = vsub.f32 %v828_v57, %v1101_v13 }
 0x32a   : > { %v1133_v26 = vmul.f32 1.442695, %v1124_v24 }
 0x32b   : > { %v1131_v28 = vmul.f32 1.442695, %v1123_v27 }
 0x390   : > { %v1113_v11 = vpop.xlane.xlu1 %1112  ;;  %v1110_v23 = vpop.xlane.xlu0 %1109 }
 0x391   : > { %v1127_v12 = vsub.f32 %v1002_v62, %v1113_v11  ;;  %v1126_v29 = vsub.f32 %v2434_v61, %v1110_v23 }
 0x393   : > { %v1139_v14 = vmul.f32 1.442695, %v1127_v12  ;;  %v1137_v31 = vmul.f32 1.442695, %v1126_v29 }
 0x394   : > { %v1107_v25 = vpop.xlane.xlu0 %1106 }
 0x395   : > { %2721 = vpow2.f32 %v1139_v14  ;;  %v1125_v33 = vsub.f32 %v915_v63, %v1107_v25 }
 0x396   : > { %2723 = vpow2.f32 %v1133_v26 }
 0x397   : > { %2725 = vpow2.f32 %v1131_v28  ;;  %v1135_v37 = vmul.f32 1.442695, %v1125_v33 }
 0x398   : > { %v1116_v30 = vpop.xlane.xlu0 %1115  ;;  %2727 = vpow2.f32 %v1137_v31  ;;  %v1513_v31 = vld [vmem:[#allocation2 + $0x10] sm:$0xff] }
 0x399   : > { %v1119_v15 = vpop.xlane.xlu1 %1118  ;;  %v1128_v32 = vsub.f32 %v2441_v60, %v1116_v30  ;;  %v1512_v30 = vld [vmem:[#allocation2 + $0x8] sm:$0xff] }
 0x39a   : > { %v1129_v41 = vsub.f32 %v1089_v4, %v1119_v15 }
 0x39b   : > { %v1141_v34 = vmul.f32 1.442695, %v1128_v32  ;;  %v1514_v32 = vld [vmem:[#allocation2 + $0x18] sm:$0xff] }
 0x39c   : > { %v1122_v35 = vpop.xlane.xlu0 %1121  ;;  %v1143_v45 = vmul.f32 1.442695, %v1129_v41 }
 0x39d   : > { %v632_v16 = vpop.permute.xlu1 %631  ;;  %2729 = vpow2.f32 %v1141_v34  ;;  %v1130_v38 = vsub.f32 %v2448_v3, %v1122_v35 }
 0x39e   : > { %v707_v17 = vadd.f32 %v706_v55, %v632_v16  ;;  %v712_v18 = vadd.f32 %v2420_v54, %v632_v16  ;;  %2731 = vpow2.f32 %v1135_v37 }
 0x39f   : > { %v3183_v19 = vpop.eup %2721  ;;  %v1145_v42 = vmul.f32 1.442695, %v1130_v38 }
 0x3a0   : > { %v2706_v20 = vpack.i.bf16 %v712_v18, %v707_v17  ;;  %v2567_v21 = vpack.c.bf16 %v712_v18, %v707_v17  ;;  %v1159_v22 = vsel %vm1098_vm3, %v3183_v19, 0.0  ;;  %v2724_v36 = vpop.eup %2723 }
 0x3a1   : > { %1160 = vadd.xlane.f32.xlu1 %v1159_v22  ;;  %v1150_v39 = vsel %vm1098_vm3, %v2724_v36, 0.0  ;;  %v2726_v40 = vpop.eup %2725  ;;  %2733 = vpow2.f32 %v1145_v42 }
 0x3a2   : > { %2707 = vrot.lane.b32.xlu0 %v2706_v20, %s2894_s19  ;;  %2568 = vmatprep.subr.bf16.mxu0 %v2567_v21  ;;  %v1147_v43 = vsel %vm1098_vm3, %v2726_v40, 0.0  ;;  %v2728_v44 = vpop.eup %2727  ;;  %2735 = vpow2.f32 %v1143_v45  ;;  %s503_s19 = sand.u32 1, %s2879_s30  }
 0x3a3   : > { %2570 = vmatpush3.bf16.msra.mxu0 %v2567_v21  ;;  %v1156_v46 = vsel %vm1098_vm3, %v2728_v44, 0.0  ;;  %s2266_s15 = sshll.u32 %s503_s19, 4 }
 0x3a4   : > { %s505_s27 = scalar_lea.vmem [#allocation7], %s2266_s15 }
 0x3a5   : > { %s2162_s14 = sshll.u32 %s505_s27, 4  ;;  %s3291_s14 = int_to_ptr.vmem [resolvable:$true] %s2162_s14 }
 0x3a6   : > { %s2817_s17 = scalar_lea.vmem %s3291_s14, 256 }
 0x3a7   : > { %v3192_v47 = vpop.eup %2729  ;;  %p2818_p12 = scmp.ne.s32.totalorder %s3291_s14, %s2817_s17 }
 0x3a8   : > { %v1162_v48 = vsel %vm1098_vm3, %v3192_v47, 0.0  ;;  %v2732_v49 = vpop.eup %2731 }
 0x3a9   : > { %v1153_v50 = vsel %vm1098_vm3, %v2732_v49, 0.0  ;;  %p2819_p2 = pnand %p2818_p12, %p3383_p1 }
 0x3ab   : > { %v2734_v51 = vpop.eup %2733  ;;  %p2820_p3 = pneg %p2819_p2 }
 0x3ac   : > { %v1168_v52 = vsel %vm1098_vm3, %v2734_v51, 0.0  ;;  %v2736_v53 = vpop.eup %2735 }
 0x3ad   : > { %v1165_v54 = vsel %vm1098_vm3, %v2736_v53, 0.0 }
 0x3b2   : > { %2717 = vrot.lane.b32.xlu1 %v2706_v20, %s2895_s22  ;;  %s2898_s22 = smov [#allocation7]  }
 0x3b3   : > { %s2821_s29 = sshll.u32 %s2898_s22, 4  ;;  %s2822_s29 = int_to_ptr.vmem [resolvable:$false] %s2821_s29 }
 0x3b4   : > { %s2823_s15 = scalar_lea.vmem %s2822_s29, 512  ;;  %p2824_p4 = scmp.lt.s32.totalorder %s3291_s14, %s2822_s29 }
 0x3b5   : > { %p2825_p7 = scmp.lt.s32.totalorder %s2823_s15, %s2817_s17 }
 0x3b7   : > { %p2826_p8 = por %p2825_p7, %p2824_p4 }
 0x3b9   : > { %p2827_p11 = pnand %p2826_p8, %p2820_p3 }
 0x3c1   : > { %1151 = vadd.xlane.f32.xlu0 %v1150_v39 }
 0x3c5   : > { %1148 = vadd.xlane.f32.xlu0 %v1147_v43 }
 0x3c9   : > { %1157 = vadd.xlane.f32.xlu0 %v1156_v46 }
 0x3cd   : > { %1163 = vadd.xlane.f32.xlu0 %v1162_v48 }
 0x3d1   : > { %1154 = vadd.xlane.f32.xlu0 %v1153_v50 }
 0x3d5   : > { %1169 = vadd.xlane.f32.xlu0 %v1168_v52 }
 0x3d9   : > { %1166 = vadd.xlane.f32.xlu0 %v1165_v54 }
 0x3ef   : > { %2712 = vrot.lane.b32.xlu0 %v2706_v20, %s2893_s25  ;;  %s3294_s25 = scalar_lea.sflag [#allocation4], %s503_s19 }
 0x414   : > { %v2708_v55 = vpop.permute.xlu0 %2707 }
 0x415   : > { %v2710_v56 = vunpack.i.h.bf16 %v2708_v55  ;;  %v2709_v57 = vunpack.i.l.bf16 %v2708_v55 }
 0x417   : > { %v2571_v58 = vpack.c.bf16 %v2710_v56, %v2709_v57 }
 0x419   : > { %2572 = vmatprep.subr.bf16.mxu0 %v2571_v58 }
 0x42e   : > { %v1161_v59 = vpop.xlane.xlu1 %1160 }
 0x432   : > { %v2718_v60 = vpop.permute.xlu1 %2717 }
 0x433   : > { %v2720_v61 = vunpack.i.h.bf16 %v2718_v60  ;;  %v2719_v62 = vunpack.i.l.bf16 %v2718_v60 }
 0x435   : > { %v2579_v63 = vpack.c.bf16 %v2720_v61, %v2719_v62 }
 0x437   : > { %2580 = vmatprep.subr.bf16.mxu1 %v2579_v63 }
 0x438   : > { %2582 = vmatpush3.bf16.msra.mxu1 %v2579_v63 }
 0x439   : > { %2482 = vmatprep.subr.mxu1 %v1512_v30 }
 0x44e   : > { %v1152_v0 = vpop.xlane.xlu0 %1151 }
 0x44f   : > { %2737 = vrcp.f32 %v1152_v0 }
 0x452   : > { %v1149_v1 = vpop.xlane.xlu0 %1148 }
 0x453   : > { %2739 = vrcp.f32 %v1149_v1 }
 0x454   : > { %2741 = vrcp.f32 %v1161_v59  ;;  %v2308_v59 = vld [vmem:[%s3340_s5] ss:$0 sm:$0xff] }
 0x456   : > { %v1158_v2 = vpop.xlane.xlu0 %1157 }
 0x457   : > { %2743 = vrcp.f32 %v1158_v2 }
 0x459   : > { %v2738_v4 = vpop.eup %2737 }
 0x45a   : > { %v1164_v3 = vpop.xlane.xlu0 %1163  ;;  %v1180_v9 = vmul.f32 %v2738_v4, %v2724_v36 }
 0x45d   : > { %v2740_v5 = vpop.eup %2739 }
 0x45e   : > { %v1155_v7 = vpop.xlane.xlu0 %1154  ;;  %v1179_v8 = vmul.f32 %v2740_v5, %v2726_v40  ;;  %v2742_v14 = vpop.eup %2741 }
 0x45f   : > { %2745 = vrcp.f32 %v1155_v7  ;;  %v1183_v13 = vmul.f32 %v2742_v14, %v3183_v19  ;;  %v1511_v19 = vld [vmem:[#allocation2] sm:$0xff] }
 0x460   : > { %2453 = vmatprep.mubr.msk.f32.mxu0 %vm1098_vm3, %v1179_v8  ;;  %2747 = vrcp.f32 %v1164_v3 }
 0x461   : > { %2454 = vmatmul.mubr.msk.f32.vlgmr.msra.gmra.mrb[6].mxu0 %vm1098_vm3, %v1180_v9  ;;  %v2744_v15 = vpop.eup %2743 }
 0x462   : > { %2574 = vmatpush3.bf16.msra.mxu0 %v2571_v58  ;;  %v1170_v11 = vpop.xlane.xlu0 %1169  ;;  %v1182_v20 = vmul.f32 %v2744_v15, %v2728_v44 }
 0x463   : > { %2749 = vrcp.f32 %v1170_v11 }
 0x466   : > { %v1167_v12 = vpop.xlane.xlu0 %1166 }
 0x467   : > { %2751 = vrcp.f32 %v1167_v12 }
 0x469   : > { %v2746_v16 = vpop.eup %2745 }
 0x46a   : > { %v2713_v17 = vpop.permute.xlu0 %2712  ;;  %v1181_v18 = vmul.f32 %v2746_v16, %v2732_v49  ;;  %v2748_v24 = vpop.eup %2747 }
 0x46b   : > { %v2715_v21 = vunpack.i.h.bf16 %v2713_v17  ;;  %v2714_v22 = vunpack.i.l.bf16 %v2713_v17  ;;  %v1184_v27 = vmul.f32 %v2748_v24, %v3192_v47  ;;  %v2004_v24 = vld [vmem:[%s3345_s10 + $0x8] sm:$0xff] }
 0x46c   : > { %2460 = vmatprep.mubr.msk.f32.mxu0 %vm1098_vm3, %v1181_v18  ;;  %v1910_v18 = vld [vmem:[#allocation5 + $0x8] sm:$0xff] }
 0x46d   : > { %v2575_v23 = vpack.c.bf16 %v2715_v21, %v2714_v22  ;;  %2461 = vmatmul.mubr.msk.f32.vlgmr.msra.gmra.mrb[8].mxu0 %vm1098_vm3, %v1182_v20  ;;  %v2750_v25 = vpop.eup %2749  ;;  %v1911_v21 = vld [vmem:[#allocation5 + $0x10] sm:$0xff]  ;;  %v1912_v22 = vld [vmem:[#allocation5 + $0x18] sm:$0xff] }
 0x46e   : > { %2467 = vmatprep.mubr.msk.f32.mxu0 %vm1098_vm3, %v1183_v13  ;;  %v1186_v29 = vmul.f32 %v2750_v25, %v2734_v51  ;;  %v2587_v13 = vpack.c.bf16 %v1912_v22, %v1911_v21  ;;  %v2005_v25 = vld [vmem:[%s3345_s10 + $0x10] sm:$0xff]  ;;  %v2317_v21 = vld [vmem:[%s3347_s12] ss:$0 sm:$0xff] }
 0x46f   : > { %2576 = vmatprep.subr.bf16.mxu0 %v2575_v23 }
 0x470   : > { %2578 = vmatpush3.bf16.msra.mxu0 %v2575_v23  ;;  %v2003_v23 = vld [vmem:[%s3345_s10] sm:$0xff] }
 0x471   : > { %v2752_v26 = vpop.eup %2751  ;;  %2477 = vmatprep.subr.mxu0 %v1511_v19 }
 0x472   : > { %v1185_v28 = vmul.f32 %v2752_v26, %v2736_v53  ;;  %v2591_v26 = vpack.c.bf16 %v2004_v24, %v2003_v23 }
 0x473   : > { %2468 = vmatmul.mubr.msk.f32.vlgmr.msra.gmra.mrb[10].mxu0 %vm1098_vm3, %v1184_v27  ;;  %v2006_v27 = vld [vmem:[%s3345_s10 + $0x18] sm:$0xff] }
 0x474   : > { %2474 = vmatprep.mubr.msk.f32.mxu1 %vm1098_vm3, %v1185_v28  ;;  %2478 = vmatpush3.msra.mxu0 %v1511_v19  ;;  %v2595_v28 = vpack.c.bf16 %v2006_v27, %v2005_v25  ;;  %v2008_v19 = vld [vmem:[%s3345_s10 + $0x28] sm:$0xff] }
 0x475   : > { %2475 = vmatmul.mubr.msk.f32.vlgmr.msra.gmra.mrb[6].mxu1 %vm1098_vm3, %v1186_v29  ;;  %2487 = vmatprep.subr.mxu0 %v1513_v31  ;;  %v2007_v29 = vld [vmem:[%s3345_s10 + $0x20] sm:$0xff] }
 0x476   : > { %2483 = vmatpush3.msra.mxu1 %v1512_v30  ;;  %v2599_v30 = vpack.c.bf16 %v2008_v19, %v2007_v29 }
 0x477   : > { %2492 = vmatprep.subr.mxu1 %v1514_v32 }
 0x534   : > { %v2455_v33 = vpop.f32.mrb[6].mxu0 }
 0x535   : > { %v1259_v34 = vpop.f32.mrb[7].mxu0 }
 0x536   : > { %2479 = vmatprep.mubr.msk.f32.mxu0 %vm753_vm1, %v1259_v34 }
 0x537   : > { %2480 = vmatmul.mubr.msk.f32.vlgmr.msra.gmra.mrb[12].mxu0 %vm753_vm1, %v2455_v33 }
 0x538   : > { %2488 = vmatpush3.msra.mxu0 %v1513_v31 }
 0x540   : > { %v2462_v35 = vpop.f32.mrb[8].mxu0 }
 0x541   : > { %v1340_v36 = vpop.f32.mrb[9].mxu0 }
 0x542   : > { %2484 = vmatprep.mubr.msk.f32.mxu1 %vm753_vm1, %v1340_v36 }
 0x543   : > { %2485 = vmatmul.mubr.msk.f32.vlgmr.msra.gmra.mrb[8].mxu1 %vm753_vm1, %v2462_v35 }
 0x544   : > { %2493 = vmatpush3.msra.mxu1 %v1514_v32 }
 0x545   : > { %2592 = vmatprep.subr.bf16.mxu1 %v2591_v26 }
 0x546   : > { %v2469_v37 = vpop.f32.mrb[10].mxu0 }
 0x547   : > { %v1421_v38 = vpop.f32.mrb[11].mxu0 }
 0x548   : > { %v2476_v39 = vpop.f32.mrb[6].mxu1  ;;  %2489 = vmatprep.mubr.msk.f32.mxu0 %vm753_vm1, %v1421_v38  ;;  %v2309_v38 = vld [vmem:[%s3341_s6] ss:$0 sm:$0xff] }
 0x549   : > { %v1502_v40 = vpop.f32.mrb[7].mxu1  ;;  %2490 = vmatmul.mubr.msk.f32.vlgmr.msra.gmra.mrb[14].mxu0 %vm753_vm1, %v2469_v37 }
 0x54a   : > { %2494 = vmatprep.mubr.msk.f32.mxu1 %vm753_vm1, %v1502_v40  ;;  %v2310_v40 = vld [vmem:[%s3342_s7] ss:$0 sm:$0xff] }
 0x54b   : > { %2495 = vmatmul.mubr.msk.f32.vlgmr.msra.gmra.mrb[10].mxu1 %vm753_vm1, %v2476_v39 }
 0x54c   : > { %2594 = vmatpush3.bf16.msra.mxu1 %v2591_v26 }
 0x54d   : > { %2596 = vmatprep.subr.bf16.mxu1 %v2595_v28 }
 0x550   : > { %2598 = vmatpush3.bf16.msra.mxu1 %v2595_v28 }
 0x551   : > { %2600 = vmatprep.subr.bf16.mxu1 %v2599_v30 }
 0x554   : > { %2602 = vmatpush3.bf16.msra.mxu1 %v2599_v30 }
 0x60a   : > { %v2481_v41 = vpop.f32.mrb[12].mxu0 }
 0x60b   : > { %v1587_v42 = vpop.f32.mrb[13].mxu0  ;;  %v1846_v44 = vsel %vm533_vm0, %v2481_v41, 0.0 }
 0x60c   : > { %v1839_v47 = vsel %vm533_vm0, %v1587_v42, 0.0 }
 0x616   : > { %v2486_v43 = vpop.f32.mrb[8].mxu1 }
 0x617   : > { %v1847_v45 = vsel %vm533_vm0, %v2486_v43, 0.0  ;;  %v1668_v46 = vpop.f32.mrb[9].mxu1 }
 0x618   : > { %v1848_v48 = vadd.f32 %v1847_v45, %v1846_v44  ;;  %v1840_v49 = vsel %vm533_vm0, %v1668_v46, 0.0 }
 0x619   : > { %v1841_v50 = vadd.f32 %v1840_v49, %v1839_v47  ;;  %v2009_v47 = vld [vmem:[%s3345_s10 + $0x30] sm:$0xff] }
 0x61c   : > { %v2491_v51 = vpop.f32.mrb[14].mxu0 }
 0x61d   : > { %v1849_v52 = vsel %vm533_vm0, %v2491_v51, 0.0  ;;  %v1749_v53 = vpop.f32.mrb[15].mxu0 }
 0x61e   : > { %v1850_v54 = vadd.f32 %v1849_v52, %v1848_v48  ;;  %v1842_v55 = vsel %vm533_vm0, %v1749_v53, 0.0  ;;  %v2496_v56 = vpop.f32.mrb[10].mxu1  ;;  %v2010_v48 = vld [vmem:[%s3345_s10 + $0x38] sm:$0xff] }
 0x61f   : > { %v1843_v57 = vadd.f32 %v1842_v55, %v1841_v50  ;;  %v1851_v58 = vsel %vm533_vm0, %v2496_v56, 0.0  ;;  %v1830_v60 = vpop.f32.mrb[11].mxu1  ;;  %v2603_v49 = vpack.c.bf16 %v2010_v48, %v2009_v47  ;;  %v2311_v50 = vld [vmem:[%s3344_s9] ss:$0 sm:$0xff] }
 0x620   : > { %v1852_v61 = vadd.f32 %v1851_v58, %v1850_v54  ;;  %v1844_v62 = vsel %vm533_vm0, %v1830_v60, 0.0 }
 0x621   : > { %v1845_v63 = vadd.f32 %v1844_v62, %v1843_v57  ;;  %2604 = vmatprep.subr.bf16.mxu1 %v2603_v49  ;;  %v2314_v57 = vld [vmem:[%s3346_s11] ss:$0 sm:$0xff] }
 0x622   : > { %v1861_v0 = vadd.f32 %v2308_v59, %v1852_v61  ;;  %2606 = vmatpush3.bf16.msra.mxu1 %v2603_v49 }
 0x623   : > { %v1860_v1 = vadd.f32 %v2308_v59, %v1845_v63 }
 0x624   : > { %v1863_v2 = vadd.f32 %v1861_v0, %v3121_v10 }
 0x625   : > { %v1862_v3 = vadd.f32 %v1860_v1, %v3116_v6  ;;  %v1909_v6 = vld [vmem:[#allocation5] sm:$0xff] }
 0x626   : > { %v1869_v4 = vsel %vm533_vm0, %v1863_v2, 0.0  ;;  %v2583_v20 = vpack.c.bf16 %v1910_v18, %v1909_v6 }
 0x627   : > { %1870 = vadd.xlane.f32.xlu1 %v1869_v4  ;;  %v1866_v5 = vsel %vm533_vm0, %v1862_v3, 0.0 }
 0x628   : > { %1867 = vadd.xlane.f32.xlu0 %v1866_v5  ;;  %2584 = vmatprep.subr.bf16.mxu0 %v2583_v20 }
 0x629   : > { %2586 = vmatpush3.bf16.msra.mxu0 %v2583_v20 }
 0x62a   : > { %2588 = vmatprep.subr.bf16.mxu0 %v2587_v13 }
 0x62d   : > { %2590 = vmatpush3.bf16.msra.mxu0 %v2587_v13  ;;  %v2318_v13 = vld [vmem:[%s3348_s13] ss:$0 sm:$0xff] }
 0x6b4   : > { %v1871_v7 = vpop.xlane.xlu1 %1870 }
 0x6b5   : > { %v1874_v8 = vmul.f32 0.03125, %v1871_v7  ;;  %v1868_v9 = vpop.xlane.xlu0 %1867 }
 0x6b6   : > { %v1873_v11 = vmul.f32 0.03125, %v1868_v9 }
 0x6b7   : > { %v1876_v12 = vsub.f32 %v1863_v2, %v1874_v8 }
 0x6b8   : > { %v1875_v14 = vsub.f32 %v1862_v3, %v1873_v11 }
 0x6b9   : > { %v1878_v17 = vmul.f32 %v1876_v12, %v1876_v12 }
 0x6ba   : > { %v1877_v15 = vmul.f32 %v1875_v14, %v1875_v14 }
 0x6bb   : > { %v1882_v10 = vsel %vm533_vm0, %v1878_v17, 0.0 }
 0x6bc   : > { %v1879_v16 = vsel %vm533_vm0, %v1877_v15, 0.0 }
 0x6bd   : > { %1880 = vadd.xlane.f32.xlu0 %v1879_v16 }
 0x6c1   : > { %1883 = vadd.xlane.f32.xlu0 %v1882_v10 }
 0x74a   : > { %v1881_v31 = vpop.xlane.xlu0 %1880 }
 0x74b   : > { %v1885_v32 = vmul.f32 0.03125, %v1881_v31 }
 0x74d   : > { %v1887_v33 = vadd.f32 1e-05, %v1885_v32 }
 0x74e   : > { %v1884_v34 = vpop.xlane.xlu0 %1883 }
 0x74f   : > { %2753 = vrsqrt.f32 %v1887_v33  ;;  %v1886_v35 = vmul.f32 0.03125, %v1884_v34 }
 0x751   : > { %v1888_v36 = vadd.f32 1e-05, %v1886_v35 }
 0x753   : > { %2755 = vrsqrt.f32 %v1888_v36 }
 0x759   : > { %v2754_v37 = vpop.eup %2753 }
 0x75a   : > { %v1891_v39 = vmul.f32 %v2754_v37, %v1875_v14 }
 0x75c   : > { %v1899_v41 = vmul.f32 %v2309_v38, %v1891_v39 }
 0x75d   : > { %v2756_v42 = vpop.eup %2755 }
 0x75e   : > { %v1892_v43 = vmul.f32 %v2756_v42, %v1876_v12  ;;  %v1907_v44 = vadd.f32 %v2310_v40, %v1899_v41 }
 0x760   : > { %v1900_v45 = vmul.f32 %v2309_v38, %v1892_v43  ;;  %2505 = vmatprep.mubr.msk.f32.mxu0 %vm533_vm0, %v1907_v44 }
 0x762   : > { %v1908_v46 = vadd.f32 %v2310_v40, %v1900_v45 }
 0x764   : > { %2506 = vmatmul.mubr.msk.f32.vlgmr.msra.gmra.mrb[16].mxu0 %vm533_vm0, %v1908_v46 }
 0x837   : > { %v2507_v51 = vpop.f32.mrb[16].mxu0 }
 0x838   : > { %v1998_v52 = vadd.f32 %v2507_v51, %v2311_v50  ;;  %v1992_v53 = vpop.f32.mrb[17].mxu0 }
 0x839   : > { %v1993_v54 = vadd.f32 %v2311_v50, %v1992_v53 }
 0x83a   : > { %v2002_v56 = vmax.f32 %v1998_v52, 0.0 }
 0x83b   : > { %v2001_v55 = vmax.f32 %v1993_v54, 0.0 }
 0x83d   : > { %2524 = vmatprep.mubr.msk.f32.mxu1 %vm2018_vm4, %v2001_v55 }
 0x83e   : > { %2525 = vmatmul.mubr.msk.f32.vlgmr.msra.gmra.mrb[12].mxu1 %vm2018_vm4, %v2002_v56 }
 0x911   : > { %v2526_v58 = vpop.f32.mrb[12].mxu1 }
 0x912   : > { %v2091_v59 = vpop.f32.mrb[13].mxu1  ;;  %v2097_v60 = vadd.f32 %v2526_v58, %v2314_v57 }
 0x913   : > { %v2092_v61 = vadd.f32 %v2314_v57, %v2091_v59 }
 0x914   : > { %v2101_v0 = vadd.f32 %v2097_v60, %v1908_v46 }
 0x915   : > { %v2100_v62 = vadd.f32 %v2092_v61, %v1907_v44 }
 0x916   : > { %v2107_v1 = vsel %vm533_vm0, %v2101_v0, 0.0 }
 0x917   : > { %v2104_v63 = vsel %vm533_vm0, %v2100_v62, 0.0 }
 0x918   : > { %2105 = vadd.xlane.f32.xlu0 %v2104_v63 }
 0x91c   : > { %2108 = vadd.xlane.f32.xlu0 %v2107_v1 }
 0x9a5   : > { %v2106_v2 = vpop.xlane.xlu0 %2105 }
 0x9a6   : > { %v2110_v3 = vmul.f32 0.03125, %v2106_v2 }
 0x9a8   : > { %v2112_v4 = vsub.f32 %v2100_v62, %v2110_v3 }
 0x9a9   : > { %v2109_v5 = vpop.xlane.xlu0 %2108 }
 0x9aa   : > { %v2111_v7 = vmul.f32 0.03125, %v2109_v5  ;;  %v2114_v8 = vmul.f32 %v2112_v4, %v2112_v4 }
 0x9ac   : > { %v2113_v9 = vsub.f32 %v2101_v0, %v2111_v7  ;;  %v2116_v11 = vsel %vm533_vm0, %v2114_v8, 0.0 }
 0x9ad   : > { %2117 = vadd.xlane.f32.xlu0 %v2116_v11 }
 0x9ae   : > { %v2115_v12 = vmul.f32 %v2113_v9, %v2113_v9 }
 0x9b0   : > { %v2119_v14 = vsel %vm533_vm0, %v2115_v12, 0.0 }
 0x9b1   : > { %2120 = vadd.xlane.f32.xlu1 %v2119_v14 }
 0xa3a   : > { %v2118_v15 = vpop.xlane.xlu0 %2117 }
 0xa3b   : > { %v2122_v16 = vmul.f32 0.03125, %v2118_v15 }
 0xa3d   : > { %v2124_v17 = vadd.f32 1e-05, %v2122_v16 }
 0xa3e   : > { %v2121_v10 = vpop.xlane.xlu1 %2120 }
 0xa3f   : > { %2757 = vrsqrt.f32 %v2124_v17  ;;  %v2123_v6 = vmul.f32 0.03125, %v2121_v10 }
 0xa41   : > { %v2125_v18 = vadd.f32 1e-05, %v2123_v6 }
 0xa43   : > { %2759 = vrsqrt.f32 %v2125_v18 }
 0xa49   : > { %v2758_v20 = vpop.eup %2757 }
 0xa4a   : > { %v2128_v22 = vmul.f32 %v2758_v20, %v2112_v4 }
 0xa4c   : > { %v2136_v23 = vmul.f32 %v2317_v21, %v2128_v22 }
 0xa4d   : > { %v2760_v24 = vpop.eup %2759 }
 0xa4e   : > { %v2144_v25 = vadd.f32 %v2318_v13, %v2136_v23  ;;  %v2129_v26 = vmul.f32 %v2760_v24, %v2113_v9 }
 0xa50   : > { %v2137_v27 = vmul.f32 %v2317_v21, %v2129_v26  ;;  %2146 = vst.msk [vmem:[%s505_s27] sm:$0xff] %vm533_vm0, %v2144_v25 }
 0xa52   : > { %v2145_v28 = vadd.f32 %v2318_v13, %v2137_v27 }
 0xa54   : > { %2147 = vst.msk [vmem:[%s505_s27 + $0x8] sm:$0xff] %vm533_vm0, %v2145_v28 }
 0xa55   : > { %2830 = shalt.err (!%p2827_p11)
}
 0xa56   : > { %s2831_s19 = scalar_lea.hbm %s3289_s20, 256  ;;  %s2835_s18 = scalar_lea.hbm %s3382_s28, 512 }
 0xa57   : > { %p2832_p13 = scmp.ne.s32.totalorder %s3289_s20, %s2831_s19  ;;  %p2836_p6 = scmp.lt.u32.totalorder %s3289_s20, %s3382_s28 }
 0xa58   : > { %p2837_p9 = scmp.lt.u32.totalorder %s2835_s18, %s2831_s19  ;;  %p2839_p12 = scmp.lt.u32.totalorder %s2831_s19, %s3289_s20 }
 0xa59   : > { %p2833_p5 = pnand %p2832_p13, %p3383_p1 }
 0xa5a   : > { %p2838_p10 = por %p2837_p9, %p2836_p6 }
 0xa5b   : > { %p2834_p0 = pneg %p2833_p5 }
 0xa5c   : > { %p2840_p2 = por %p2839_p12, %p2838_p10 }
 0xa5e   : > { %p2841_p3 = pnand %p2840_p2, %p2834_p0 }
 0xa60   : > { %2844 = shalt.err (!%p2841_p3)
}
 0xa61   : > { %s2899_s23 = smov 128   ;;  %s2900_s17 = smov 8  }
 0xa62   : > { %2615 = dma.vmem_to_hbm [thread:$0]  (%p3383_p1), %s3291_s14, 256, %s3289_s20, %s3294_s25, %s2899_s23, %s2899_s23, %s2900_s17  }
 0xa63 PF: > { %s3384_s22 = sld [smem:[#allocation13_spill]]  ;;  %s3385_s29 = sld [smem:[#allocation11_spill]] }
 0xa64   : > { %s3386_s15 = sld [smem:[#allocation17_spill]] }
 0xa69   : > { %p2632_p4 = scmp.ge.s32.totalorder %s3384_s22, 2  ;;  %s2177_s24 = sand.u32 1, %s3385_s29  }
 0xa6a   : > { %p3387_p7 = scmp.ne.s32.totalorder %s3386_s15, 0  ;;  %s2178_s19 = scalar_lea.sflag [#allocation4], %s2177_s24 }
 0xa6c   : > { %p2625_p8 = pnand %p2632_p4, %p3387_p7 }
 0xa6e   : > { %2870 = dma.done.wait (!%p2625_p8), %s2178_s19, 256  }
 0xa6f   : > { %2872 = vsyncadd (!%p2625_p8), %s2178_s19, 4294967040  ;;  %s3388_s16 = sld [smem:[#allocation14_spill]]  ;;  %s3389_s21 = sld [smem:[#allocation12_spill]] }
 0xa70   : > { %s3390_s15 = sld [smem:[#allocation15_spill]]  ;;  %s3391_s29 = smov %s2879_s30 }
 0xa75   : > { %p26_p11 = scmp.ge.s32.totalorder %s3388_s16, 4   ;;  %s3392_s30 = smov %s3389_s21 }
 0xa77   :  { %28 = sbr.rel (!%p26_p11) target bundleno = 7 (0x7), region = 123 }
 0xa7e   :  { %2183 = vsyncpa [#allocation3], 1 }
 0xa7f   :  { %2185 = vsyncpa [#allocation3 + $0x1], 1 }
 0xa80   :  { %2186 = vsyncpa [#allocation6], 1 }
 0xa81   :  { %2187 = vsyncpa [#allocation4], 1 }
 0xa82   :  { %2189 = vsyncpa [#allocation4 + $0x1], 1 }

</bundles_post_ra>
